<compile_context>
chip_gen: v7x
topology: tpu7x:2x2x1
jax: 0.10.0
libtpu: 0.0.40
codegen_flags: <defaults>
</compile_context>

<pallas_src>
from functools import partial

import jax
import jax.numpy as jnp
from jax import lax
from jax.experimental import pallas as pl
from jax.experimental.pallas import tpu as pltpu


def _vmem_limit_bytes():
    """Generation-aware VMEM budget: ~48 MiB on v7x (64 MiB phys), ~96 MiB on v5e/v6e."""
    try:
        cap = pltpu.get_tpu_info().vmem_capacity_bytes
    except Exception:
        cap = 64 * 1024 * 1024
    return int(min(cap - 16 * 1024 * 1024, cap * 3 // 4))


_VMEM_LIMIT = _vmem_limit_bytes()


def _pick_tile(dim, target, quanta=(256, 128, 8)):
    """Largest MXU/layout-friendly divisor of `dim` that is <= target."""
    if dim <= target:
        return dim
    for q in quanta:
        t = (target // q) * q
        while t >= q:
            if dim % t == 0:
                return t
            t -= q
    # TODO(synk): pad-and-mask for dims with no friendly divisor; full-dim fallback
    # keeps correctness but may exceed the VMEM budget for huge awkward dims.
    return dim


# --------------------------------------------------------------------------- #
# 1) Fused qkv projection + head split
# --------------------------------------------------------------------------- #
def _qkv_split_kernel(x_ref, w_ref, q_ref, k_ref, v_ref, y_ref, *, num_heads, head_dim, dim):
    # x_ref: (1, tm, C); w_ref: (C, 3C); q/k/v_ref: (1, H, tm, hd); y_ref: (tm, 3C) f32
    y_ref[...] = jnp.dot(x_ref[0], w_ref[...], preferred_element_type=jnp.float32)
    # Head split: windowed VMEM reads + per-head stores (XLU/VALU, overlaps MXU of
    # the next pipelined tile).  Replaces the XLA reshape/transpose over HBM.
    for h in range(num_heads):
        base = h * head_dim
        q_ref[0, h] = y_ref[:, base:base + head_dim].astype(q_ref.dtype)
        k_ref[0, h] = y_ref[:, dim + base:dim + base + head_dim].astype(k_ref.dtype)
        v_ref[0, h] = y_ref[:, 2 * dim + base:2 * dim + base + head_dim].astype(v_ref.dtype)


def _qkv_projection(x, w_qkv, *, num_heads, out_dtype, row_tile=512):
    """x: (B, N, C); w_qkv: (C, 3C) -> q, k, v each (B, H, N, hd)."""
    B, N, C = x.shape
    hd = C // num_heads
    tm = _pick_tile(N, row_tile)
    grid = (B, N // tm)

    out_itemsize = jnp.dtype(out_dtype).itemsize
    cost = pl.CostEstimate(
        flops=int(2 * B * N * C * 3 * C),
        transcendentals=0,
        bytes_accessed=int(x.size * x.dtype.itemsize
                           + w_qkv.size * w_qkv.dtype.itemsize
                           + 3 * B * num_heads * N * hd * out_itemsize),
    )

    head_spec = pl.BlockSpec((1, num_heads, tm, hd), lambda b, i: (b, 0, i, 0))
    out_shape = tuple(jax.ShapeDtypeStruct((B, num_heads, N, hd), out_dtype) for _ in range(3))

    # NOTE: the (C,3C) weight block is resident (constant index map); for very large C
    # on v7x add a column grid axis or pipeline_mode=pl.Buffered(1) to halve its VMEM.
    return pl.pallas_call(
        partial(_qkv_split_kernel, num_heads=num_heads, head_dim=hd, dim=C),
        out_shape=out_shape,
        grid_spec=pltpu.PrefetchScalarGridSpec(
            num_scalar_prefetch=0,
            grid=grid,
            in_specs=[
                pl.BlockSpec((1, tm, C), lambda b, i: (b, i, 0)),
                pl.BlockSpec((C, 3 * C), lambda b, i: (0, 0)),
            ],
            out_specs=(head_spec, head_spec, head_spec),
            scratch_shapes=[pltpu.VMEM((tm, 3 * C), jnp.float32)],
        ),
        compiler_params=pltpu.CompilerParams(
            dimension_semantics=("parallel", "parallel"),
            vmem_limit_bytes=_VMEM_LIMIT,
        ),
        cost_estimate=cost,
    )(x, w_qkv)


# --------------------------------------------------------------------------- #
# 2) Flash attention: grid (B, H, q_tiles), kv loop inside the kernel
# --------------------------------------------------------------------------- #
def _flash_attn_kernel(q_ref, k_ref, v_ref, o_ref, *, kv_tile, num_kv, exp_dtype):
    q = q_ref[0, 0]                      # (tq, hd); softmax scale already folded into Wq
    tq, hd = q.shape

    def body(j, carry):
        m_prev, l_prev, acc_prev = carry
        start = pl.multiple_of(j * kv_tile, kv_tile)
        k = k_ref[0, 0, pl.ds(start, kv_tile), :]        # (tkv, hd)
        v = v_ref[0, 0, pl.ds(start, kv_tile), :]        # (tkv, hd)

        # Scores: contract hd of both operands (no explicit transpose through the XLU).
        s = lax.dot_general(q, k, (((1,), (1,)), ((), ())),
                            preferred_element_type=jnp.float32)        # (tq, tkv) f32

        m_new = jnp.maximum(m_prev, jnp.max(s, axis=-1, keepdims=True))
        alpha = jnp.exp(m_prev - m_new)                                  # f32 stats
        # exp() in compute dtype (bf16 on v6e/v7x -> faster EUP path); stats stay f32.
        p = jnp.exp((s - m_new).astype(exp_dtype))                       # (tq, tkv)
        l_new = alpha * l_prev + jnp.sum(p.astype(jnp.float32), axis=-1, keepdims=True)
        acc_new = alpha * acc_prev + jnp.dot(p.astype(v.dtype), v,
                                             preferred_element_type=jnp.float32)
        return m_new, l_new, acc_new

    m0 = jnp.full((tq, 1), -jnp.inf, dtype=jnp.float32)
    l0 = jnp.zeros((tq, 1), dtype=jnp.float32)
    a0 = jnp.zeros((tq, hd), dtype=jnp.float32)
    _, l_fin, acc_fin = lax.fori_loop(0, num_kv, body, (m0, l0, a0))

    inv_l = pl.reciprocal(l_fin, approx=True)            # EUP slot, co-issues
    o_ref[0, 0] = (acc_fin * inv_l).astype(o_ref.dtype)


def flash_attention(q, k, v, *, q_tile=512, kv_tile=1024, exp_dtype=None):
    """q, k, v: (B, H, N, hd) -> context (B, H, N, hd)."""
    B, H, N, hd = q.shape
    tq = _pick_tile(N, q_tile)
    tkv = _pick_tile(N, kv_tile)
    num_kv = N // tkv
    exp_dtype = q.dtype if exp_dtype is None else exp_dtype
    grid = (B, H, N // tq)

    itemsize = q.dtype.itemsize
    cost = pl.CostEstimate(
        flops=int(4 * B * H * N * N * hd),
        transcendentals=int(B * H * N * N),
        bytes_accessed=int((q.size + k.size + v.size + q.size) * itemsize),
    )

    return pl.pallas_call(
        partial(_flash_attn_kernel, kv_tile=tkv, num_kv=num_kv, exp_dtype=exp_dtype),
        out_shape=jax.ShapeDtypeStruct((B, H, N, hd), q.dtype),
        grid_spec=pltpu.PrefetchScalarGridSpec(
            num_scalar_prefetch=0,
            grid=grid,
            in_specs=[
                pl.BlockSpec((1, 1, tq, hd), lambda b, h, qi: (b, h, qi, 0)),
                # Full k/v slabs per (b,h); qi is the fastest grid axis, so these
                # blocks are only re-DMAed when (b,h) changes.
                pl.BlockSpec((1, 1, N, hd), lambda b, h, qi: (b, h, 0, 0)),
                pl.BlockSpec((1, 1, N, hd), lambda b, h, qi: (b, h, 0, 0)),
            ],
            out_specs=pl.BlockSpec((1, 1, tq, hd), lambda b, h, qi: (b, h, qi, 0)),
        ),
        compiler_params=pltpu.CompilerParams(
            dimension_semantics=("parallel", "parallel", "parallel"),
            vmem_limit_bytes=_VMEM_LIMIT,
        ),
        cost_estimate=cost,
    )(q, k, v)


# --------------------------------------------------------------------------- #
# 3) Fused head merge + output projection (with bias)
# --------------------------------------------------------------------------- #
def _proj_merge_kernel(ctx_ref, w_ref, b_ref, o_ref, *, num_heads):
    # ctx_ref: (1, H, tm, hd); w_ref: (H, hd, C); b_ref: (1, C) f32; o_ref: (1, tm, C)
    tm = ctx_ref.shape[2]
    C = w_ref.shape[2]
    acc = jnp.zeros((tm, C), jnp.float32)
    # Head merge happens inside the matmul: sum_h ctx[:,h] @ W[h] == (merged ctx) @ Wp.
    for h in range(num_heads):
        acc = acc + jnp.dot(ctx_ref[0, h], w_ref[h], preferred_element_type=jnp.float32)
    acc = acc + b_ref[...].astype(jnp.float32)
    o_ref[0] = acc.astype(o_ref.dtype)                    # lane-dense (tm, C) store


def _proj_merge(ctx, w_proj3, bias2d, *, out_dtype, row_tile=512):
    """ctx: (B, H, N, hd); w_proj3: (H, hd, C); bias2d: (1, C) -> (B, N, C)."""
    B, H, N, hd = ctx.shape
    C = w_proj3.shape[2]
    tm = _pick_tile(N, row_tile)
    grid = (B, N // tm)

    cost = pl.CostEstimate(
        flops=int(2 * B * N * C * C),
        transcendentals=0,
        bytes_accessed=int(ctx.size * ctx.dtype.itemsize
                           + w_proj3.size * w_proj3.dtype.itemsize
                           + bias2d.size * bias2d.dtype.itemsize
                           + B * N * C * jnp.dtype(out_dtype).itemsize),
    )

    return pl.pallas_call(
        partial(_proj_merge_kernel, num_heads=H),
        out_shape=jax.ShapeDtypeStruct((B, N, C), out_dtype),
        grid_spec=pltpu.PrefetchScalarGridSpec(
            num_scalar_prefetch=0,
            grid=grid,
            in_specs=[
                pl.BlockSpec((1, H, tm, hd), lambda b, i: (b, 0, i, 0)),
                pl.BlockSpec((H, hd, C), lambda b, i: (0, 0, 0)),
                pl.BlockSpec((1, C), lambda b, i: (0, 0)),
            ],
            out_specs=pl.BlockSpec((1, tm, C), lambda b, i: (b, i, 0)),
        ),
        compiler_params=pltpu.CompilerParams(
            dimension_semantics=("parallel", "parallel"),
            vmem_limit_bytes=_VMEM_LIMIT,
        ),
        cost_estimate=cost,
    )(ctx, w_proj3, bias2d)


# --------------------------------------------------------------------------- #
# Full module forward
# --------------------------------------------------------------------------- #
def attention_pallas(x, w_qkv, w_proj, b_proj, *, num_heads,
                     compute_dtype=jnp.bfloat16, softmax_exp_dtype=None,
                     q_tile=512, kv_tile=1024, row_tile=512):
    """x: (B, N, C); w_qkv: (C, 3C) (= qkv.weight.T); w_proj: (C, C) (= proj.weight.T);
    b_proj: (C,) or (1, C).

    Matmul operands run in `compute_dtype` (bf16 by default) with f32 accumulation and
    f32 softmax statistics.  On v5e pass softmax_exp_dtype=jnp.float32 (no bf16 EUP).
    """
    B, N, C = x.shape
    assert C % num_heads == 0
    hd = C // num_heads
    scale = hd ** (-0.5)
    out_dtype = x.dtype

    # Fold the softmax scale into the q-columns of Wqkv in f32 (trace-time, tiny):
    # removes the per-step q scaling from the flash kernel and is more accurate than
    # scaling q in bf16.
    w_qkv_f32 = w_qkv.astype(jnp.float32)
    w_qkv_scaled = jnp.concatenate([w_qkv_f32[:, :C] * scale, w_qkv_f32[:, C:]], axis=1)

    xc = x.astype(compute_dtype)
    wq = w_qkv_scaled.astype(compute_dtype)
    wp3 = w_proj.astype(compute_dtype).reshape(num_heads, hd, C)
    bias2d = jnp.asarray(b_proj, dtype=jnp.float32).reshape(1, C)

    # 1) qkv projection + head split -> q, k, v in (B, H, N, hd), no XLA transpose.
    q, k, v = _qkv_projection(xc, wq, num_heads=num_heads,
                              out_dtype=compute_dtype, row_tile=row_tile)

    # 2) flash attention with the kv loop inside the kernel.
    ctx = flash_attention(q, k, v, q_tile=q_tile, kv_tile=kv_tile,
                          exp_dtype=softmax_exp_dtype)

    # 3) head merge fused into the output projection (+ bias), no XLA transpose.
    return _proj_merge(ctx, wp3, bias2d, out_dtype=out_dtype, row_tile=row_tile)


def attention_reference(x, w_qkv, w_proj, b_proj, *, num_heads):
    """Pure-JAX reference mirroring the PyTorch forward."""
    B, N, C = x.shape
    hd = C // num_heads
    scale = hd ** (-0.5)
    qkv = x @ w_qkv
    qkv = qkv.reshape(B, N, 3, num_heads, hd).transpose(2, 0, 3, 1, 4)
    q, k, v = qkv[0], qkv[1], qkv[2]
    attn = jnp.einsum('bhnd,bhmd->bhnm', q, k) * scale
    attn = jax.nn.softmax(attn, axis=-1)
    ctx = jnp.einsum('bhnm,bhmd->bhnd', attn, v)
    ctx = ctx.transpose(0, 2, 1, 3).reshape(B, N, C)
    return ctx @ w_proj + jnp.asarray(b_proj).reshape(1, C)


def _rel_err(a, b):
    a = jnp.asarray(a, jnp.float32)
    b = jnp.asarray(b, jnp.float32)
    return float(jnp.linalg.norm(a - b) / (jnp.linalg.norm(b) + 1e-12))


if __name__ == "__main__":
    # Small shapes consistent with the module: B=2, N=8 (seq), C=32 (dim), 4 heads.
    B, N, C = 2, 8, 32
    num_heads = 4

    key = jax.random.PRNGKey(0)
    kx, kqkv, kproj, kbias = jax.random.split(key, 4)

    x = jax.random.normal(kx, (B, N, C), dtype=jnp.float32)
    w_qkv = jax.random.normal(kqkv, (C, 3 * C), dtype=jnp.float32) * (C ** -0.5)
    w_proj = jax.random.normal(kproj, (C, C), dtype=jnp.float32) * (C ** -0.5)
    b_proj = jax.random.normal(kbias, (1, C), dtype=jnp.float32) * 0.01

    ref = attention_reference(x, w_qkv, w_proj, b_proj, num_heads=num_heads)

    # f32 compute path.  NOTE: tolerances account for TPU DEFAULT matmul precision
    # (f32 matmuls may run as single-pass bf16 on the MXU) and the approximate
    # reciprocal in the softmax normalization; structural bugs would give O(1) error.
    out_f32 = attention_pallas(x, w_qkv, w_proj, b_proj, num_heads=num_heads,
                               compute_dtype=jnp.float32)
    out_f32 = jax.block_until_ready(out_f32)
    assert out_f32.shape == (B, N, C)
    e32 = _rel_err(out_f32, ref)
    assert e32 < 3e-2, f"f32 path mismatch: rel_err={e32}"

    # Default bf16 MXU path: f32 accumulation; looser tolerance from bf16 rounding.
    out_bf16 = attention_pallas(x, w_qkv, w_proj, b_proj, num_heads=num_heads)
    out_bf16 = jax.block_until_ready(out_bf16)
    assert out_bf16.shape == (B, N, C)
    e16 = _rel_err(out_bf16, ref)
    assert e16 < 8e-2, f"bf16 path mismatch: rel_err={e16}"

    print("KERNEL_OK")
</pallas_src>

<mosaic_0001>
module attributes {stable_mosaic.version = 11 : i64} {
  func.func @_qkv_split_kernel(%arg0: i32, %arg1: i32, %arg2: memref<1x8x32xf32, #tpu.memory_space<vmem>>, %arg3: memref<32x96xf32, #tpu.memory_space<vmem>>, %arg4: memref<1x4x8x8xf32, #tpu.memory_space<vmem>>, %arg5: memref<1x4x8x8xf32, #tpu.memory_space<vmem>>, %arg6: memref<1x4x8x8xf32, #tpu.memory_space<vmem>>, %arg7: memref<8x96xf32, #tpu.memory_space<vmem>>) attributes {dimension_semantics = [#tpu.dimension_semantics<parallel>, #tpu.dimension_semantics<parallel>], iteration_bounds = array<i64: 2, 1>, scalar_prefetch = 0 : i64, scratch_operands = 1 : i64, tpu.core_type = #tpu.core_type<tc>, window_params = [{transform_indices = @transform_0, window_bounds = array<i64: 1, 8, 32>}, {pipeline_mode = #tpu.pipeline_mode<synchronous>, transform_indices = @transform_1, window_bounds = array<i64: 32, 96>}, {transform_indices = @transform_2, window_bounds = array<i64: 1, 4, 8, 8>}, {transform_indices = @transform_3, window_bounds = array<i64: 1, 4, 8, 8>}, {transform_indices = @transform_4, window_bounds = array<i64: 1, 4, 8, 8>}]} {
    %c0 = arith.constant 0 : index
    %c0_0 = arith.constant 0 : index
    %c0_1 = arith.constant 0 : index
    %0 = vector.load %arg2[%c0, %c0_0, %c0_1] : memref<1x8x32xf32, #tpu.memory_space<vmem>>, vector<1x8x32xf32>
    %1 = vector.shape_cast %0 : vector<1x8x32xf32> to vector<8x32xf32>
    %c0_2 = arith.constant 0 : index
    %c0_3 = arith.constant 0 : index
    %2 = vector.load %arg3[%c0_2, %c0_3] : memref<32x96xf32, #tpu.memory_space<vmem>>, vector<32x96xf32>
    %cst = arith.constant dense<0.000000e+00> : vector<8x96xf32>
    %3 = tpu.matmul %1, %2, %cst {dimension_numbers = #tpu.dot_dimension_numbers<[1], [0], [0], [1], [0, 0, 1, 1], [], []>} : vector<8x32xf32>, vector<32x96xf32>, vector<8x96xf32> -> vector<8x96xf32>
    %c0_4 = arith.constant 0 : index
    %c0_5 = arith.constant 0 : index
    %4 = vector.load %arg7[%c0_4, %c0_5] : memref<8x96xf32, #tpu.memory_space<vmem>>, vector<8x96xf32>
    tpu.vector_store %arg7[%c0_4, %c0_5], %3 {strides = array<i32>} : memref<8x96xf32, #tpu.memory_space<vmem>>, vector<8x96xf32>,
    %c0_6 = arith.constant 0 : index
    %c0_7 = arith.constant 0 : index
    %5 = vector.load %arg7[%c0_6, %c0_7] : memref<8x96xf32, #tpu.memory_space<vmem>>, vector<8x8xf32>
    %c0_8 = arith.constant 0 : index
    %c0_9 = arith.constant 0 : index
    %c0_10 = arith.constant 0 : index
    %c0_11 = arith.constant 0 : index
    %6 = vector.load %arg4[%c0_8, %c0_9, %c0_10, %c0_11] : memref<1x4x8x8xf32, #tpu.memory_space<vmem>>, vector<1x1x8x8xf32>
    %7 = vector.shape_cast %6 : vector<1x1x8x8xf32> to vector<8x8xf32>
    %8 = vector.shape_cast %5 : vector<8x8xf32> to vector<1x1x8x8xf32>
    tpu.vector_store %arg4[%c0_8, %c0_9, %c0_10, %c0_11], %8 {strides = array<i32>} : memref<1x4x8x8xf32, #tpu.memory_space<vmem>>, vector<1x1x8x8xf32>,
    %c0_12 = arith.constant 0 : index
    %c32 = arith.constant 32 : index
    %9 = vector.load %arg7[%c0_12, %c32] : memref<8x96xf32, #tpu.memory_space<vmem>>, vector<8x8xf32>
    %c0_13 = arith.constant 0 : index
    %c0_14 = arith.constant 0 : index
    %c0_15 = arith.constant 0 : index
    %c0_16 = arith.constant 0 : index
    %10 = vector.load %arg5[%c0_13, %c0_14, %c0_15, %c0_16] : memref<1x4x8x8xf32, #tpu.memory_space<vmem>>, vector<1x1x8x8xf32>
    %11 = vector.shape_cast %10 : vector<1x1x8x8xf32> to vector<8x8xf32>
    %12 = vector.shape_cast %9 : vector<8x8xf32> to vector<1x1x8x8xf32>
    tpu.vector_store %arg5[%c0_13, %c0_14, %c0_15, %c0_16], %12 {strides = array<i32>} : memref<1x4x8x8xf32, #tpu.memory_space<vmem>>, vector<1x1x8x8xf32>,
    %c0_17 = arith.constant 0 : index
    %c64 = arith.constant 64 : index
    %13 = vector.load %arg7[%c0_17, %c64] : memref<8x96xf32, #tpu.memory_space<vmem>>, vector<8x8xf32>
    %c0_18 = arith.constant 0 : index
    %c0_19 = arith.constant 0 : index
    %c0_20 = arith.constant 0 : index
    %c0_21 = arith.constant 0 : index
    %14 = vector.load %arg6[%c0_18, %c0_19, %c0_20, %c0_21] : memref<1x4x8x8xf32, #tpu.memory_space<vmem>>, vector<1x1x8x8xf32>
    %15 = vector.shape_cast %14 : vector<1x1x8x8xf32> to vector<8x8xf32>
    %16 = vector.shape_cast %13 : vector<8x8xf32> to vector<1x1x8x8xf32>
    tpu.vector_store %arg6[%c0_18, %c0_19, %c0_20, %c0_21], %16 {strides = array<i32>} : memref<1x4x8x8xf32, #tpu.memory_space<vmem>>, vector<1x1x8x8xf32>,
    %c0_22 = arith.constant 0 : index
    %c8 = arith.constant 8 : index
    %17 = vector.load %arg7[%c0_22, %c8] : memref<8x96xf32, #tpu.memory_space<vmem>>, vector<8x8xf32>
    %c0_23 = arith.constant 0 : index
    %c1 = arith.constant 1 : index
    %c0_24 = arith.constant 0 : index
    %c0_25 = arith.constant 0 : index
    %18 = vector.load %arg4[%c0_23, %c1, %c0_24, %c0_25] : memref<1x4x8x8xf32, #tpu.memory_space<vmem>>, vector<1x1x8x8xf32>
    %19 = vector.shape_cast %18 : vector<1x1x8x8xf32> to vector<8x8xf32>
    %20 = vector.shape_cast %17 : vector<8x8xf32> to vector<1x1x8x8xf32>
    tpu.vector_store %arg4[%c0_23, %c1, %c0_24, %c0_25], %20 {strides = array<i32>} : memref<1x4x8x8xf32, #tpu.memory_space<vmem>>, vector<1x1x8x8xf32>,
    %c0_26 = arith.constant 0 : index
    %c40 = arith.constant 40 : index
    %21 = vector.load %arg7[%c0_26, %c40] : memref<8x96xf32, #tpu.memory_space<vmem>>, vector<8x8xf32>
    %c0_27 = arith.constant 0 : index
    %c1_28 = arith.constant 1 : index
    %c0_29 = arith.constant 0 : index
    %c0_30 = arith.constant 0 : index
    %22 = vector.load %arg5[%c0_27, %c1_28, %c0_29, %c0_30] : memref<1x4x8x8xf32, #tpu.memory_space<vmem>>, vector<1x1x8x8xf32>
    %23 = vector.shape_cast %22 : vector<1x1x8x8xf32> to vector<8x8xf32>
    %24 = vector.shape_cast %21 : vector<8x8xf32> to vector<1x1x8x8xf32>
    tpu.vector_store %arg5[%c0_27, %c1_28, %c0_29, %c0_30], %24 {strides = array<i32>} : memref<1x4x8x8xf32, #tpu.memory_space<vmem>>, vector<1x1x8x8xf32>,
    %c0_31 = arith.constant 0 : index
    %c72 = arith.constant 72 : index
    %25 = vector.load %arg7[%c0_31, %c72] : memref<8x96xf32, #tpu.memory_space<vmem>>, vector<8x8xf32>
    %c0_32 = arith.constant 0 : index
    %c1_33 = arith.constant 1 : index
    %c0_34 = arith.constant 0 : index
    %c0_35 = arith.constant 0 : index
    %26 = vector.load %arg6[%c0_32, %c1_33, %c0_34, %c0_35] : memref<1x4x8x8xf32, #tpu.memory_space<vmem>>, vector<1x1x8x8xf32>
    %27 = vector.shape_cast %26 : vector<1x1x8x8xf32> to vector<8x8xf32>
    %28 = vector.shape_cast %25 : vector<8x8xf32> to vector<1x1x8x8xf32>
    tpu.vector_store %arg6[%c0_32, %c1_33, %c0_34, %c0_35], %28 {strides = array<i32>} : memref<1x4x8x8xf32, #tpu.memory_space<vmem>>, vector<1x1x8x8xf32>,
    %c0_36 = arith.constant 0 : index
    %c16 = arith.constant 16 : index
    %29 = vector.load %arg7[%c0_36, %c16] : memref<8x96xf32, #tpu.memory_space<vmem>>, vector<8x8xf32>
    %c0_37 = arith.constant 0 : index
    %c2 = arith.constant 2 : index
    %c0_38 = arith.constant 0 : index
    %c0_39 = arith.constant 0 : index
    %30 = vector.load %arg4[%c0_37, %c2, %c0_38, %c0_39] : memref<1x4x8x8xf32, #tpu.memory_space<vmem>>, vector<1x1x8x8xf32>
    %31 = vector.shape_cast %30 : vector<1x1x8x8xf32> to vector<8x8xf32>
    %32 = vector.shape_cast %29 : vector<8x8xf32> to vector<1x1x8x8xf32>
    tpu.vector_store %arg4[%c0_37, %c2, %c0_38, %c0_39], %32 {strides = array<i32>} : memref<1x4x8x8xf32, #tpu.memory_space<vmem>>, vector<1x1x8x8xf32>,
    %c0_40 = arith.constant 0 : index
    %c48 = arith.constant 48 : index
    %33 = vector.load %arg7[%c0_40, %c48] : memref<8x96xf32, #tpu.memory_space<vmem>>, vector<8x8xf32>
    %c0_41 = arith.constant 0 : index
    %c2_42 = arith.constant 2 : index
    %c0_43 = arith.constant 0 : index
    %c0_44 = arith.constant 0 : index
    %34 = vector.load %arg5[%c0_41, %c2_42, %c0_43, %c0_44] : memref<1x4x8x8xf32, #tpu.memory_space<vmem>>, vector<1x1x8x8xf32>
    %35 = vector.shape_cast %34 : vector<1x1x8x8xf32> to vector<8x8xf32>
    %36 = vector.shape_cast %33 : vector<8x8xf32> to vector<1x1x8x8xf32>
    tpu.vector_store %arg5[%c0_41, %c2_42, %c0_43, %c0_44], %36 {strides = array<i32>} : memref<1x4x8x8xf32, #tpu.memory_space<vmem>>, vector<1x1x8x8xf32>,
    %c0_45 = arith.constant 0 : index
    %c80 = arith.constant 80 : index
    %37 = vector.load %arg7[%c0_45, %c80] : memref<8x96xf32, #tpu.memory_space<vmem>>, vector<8x8xf32>
    %c0_46 = arith.constant 0 : index
    %c2_47 = arith.constant 2 : index
    %c0_48 = arith.constant 0 : index
    %c0_49 = arith.constant 0 : index
    %38 = vector.load %arg6[%c0_46, %c2_47, %c0_48, %c0_49] : memref<1x4x8x8xf32, #tpu.memory_space<vmem>>, vector<1x1x8x8xf32>
    %39 = vector.shape_cast %38 : vector<1x1x8x8xf32> to vector<8x8xf32>
    %40 = vector.shape_cast %37 : vector<8x8xf32> to vector<1x1x8x8xf32>
    tpu.vector_store %arg6[%c0_46, %c2_47, %c0_48, %c0_49], %40 {strides = array<i32>} : memref<1x4x8x8xf32, #tpu.memory_space<vmem>>, vector<1x1x8x8xf32>,
    %c0_50 = arith.constant 0 : index
    %c24 = arith.constant 24 : index
    %41 = vector.load %arg7[%c0_50, %c24] : memref<8x96xf32, #tpu.memory_space<vmem>>, vector<8x8xf32>
    %c0_51 = arith.constant 0 : index
    %c3 = arith.constant 3 : index
    %c0_52 = arith.constant 0 : index
    %c0_53 = arith.constant 0 : index
    %42 = vector.load %arg4[%c0_51, %c3, %c0_52, %c0_53] : memref<1x4x8x8xf32, #tpu.memory_space<vmem>>, vector<1x1x8x8xf32>
    %43 = vector.shape_cast %42 : vector<1x1x8x8xf32> to vector<8x8xf32>
    %44 = vector.shape_cast %41 : vector<8x8xf32> to vector<1x1x8x8xf32>
    tpu.vector_store %arg4[%c0_51, %c3, %c0_52, %c0_53], %44 {strides = array<i32>} : memref<1x4x8x8xf32, #tpu.memory_space<vmem>>, vector<1x1x8x8xf32>,
    %c0_54 = arith.constant 0 : index
    %c56 = arith.constant 56 : index
    %45 = vector.load %arg7[%c0_54, %c56] : memref<8x96xf32, #tpu.memory_space<vmem>>, vector<8x8xf32>
    %c0_55 = arith.constant 0 : index
    %c3_56 = arith.constant 3 : index
    %c0_57 = arith.constant 0 : index
    %c0_58 = arith.constant 0 : index
    %46 = vector.load %arg5[%c0_55, %c3_56, %c0_57, %c0_58] : memref<1x4x8x8xf32, #tpu.memory_space<vmem>>, vector<1x1x8x8xf32>
    %47 = vector.shape_cast %46 : vector<1x1x8x8xf32> to vector<8x8xf32>
    %48 = vector.shape_cast %45 : vector<8x8xf32> to vector<1x1x8x8xf32>
    tpu.vector_store %arg5[%c0_55, %c3_56, %c0_57, %c0_58], %48 {strides = array<i32>} : memref<1x4x8x8xf32, #tpu.memory_space<vmem>>, vector<1x1x8x8xf32>,
    %c0_59 = arith.constant 0 : index
    %c88 = arith.constant 88 : index
    %49 = vector.load %arg7[%c0_59, %c88] : memref<8x96xf32, #tpu.memory_space<vmem>>, vector<8x8xf32>
    %c0_60 = arith.constant 0 : index
    %c3_61 = arith.constant 3 : index
    %c0_62 = arith.constant 0 : index
    %c0_63 = arith.constant 0 : index
    %50 = vector.load %arg6[%c0_60, %c3_61, %c0_62, %c0_63] : memref<1x4x8x8xf32, #tpu.memory_space<vmem>>, vector<1x1x8x8xf32>
    %51 = vector.shape_cast %50 : vector<1x1x8x8xf32> to vector<8x8xf32>
    %52 = vector.shape_cast %49 : vector<8x8xf32> to vector<1x1x8x8xf32>
    tpu.vector_store %arg6[%c0_60, %c3_61, %c0_62, %c0_63], %52 {strides = array<i32>} : memref<1x4x8x8xf32, #tpu.memory_space<vmem>>, vector<1x1x8x8xf32>,
    return
  }
  func.func @transform_0(%arg0: i32, %arg1: i32) -> (i32, i32, i32) {
    %c0_i32 = arith.constant 0 : i32
    %c0_i32_0 = arith.constant 0 : i32
    return %arg0, %arg1, %c0_i32 : i32, i32, i32
  }
  func.func @transform_1(%arg0: i32, %arg1: i32) -> (i32, i32) {
    %c0_i32 = arith.constant 0 : i32
    %c0_i32_0 = arith.constant 0 : i32
    %c0_i32_1 = arith.constant 0 : i32
    return %c0_i32, %c0_i32_0 : i32, i32
  }
  func.func @transform_2(%arg0: i32, %arg1: i32) -> (i32, i32, i32, i32) {
    %c0_i32 = arith.constant 0 : i32
    %c0_i32_0 = arith.constant 0 : i32
    %c0_i32_1 = arith.constant 0 : i32
    return %arg0, %c0_i32, %arg1, %c0_i32_0 : i32, i32, i32, i32
  }
  func.func @transform_3(%arg0: i32, %arg1: i32) -> (i32, i32, i32, i32) {
    %c0_i32 = arith.constant 0 : i32
    %c0_i32_0 = arith.constant 0 : i32
    %c0_i32_1 = arith.constant 0 : i32
    return %arg0, %c0_i32, %arg1, %c0_i32_0 : i32, i32, i32, i32
  }
  func.func @transform_4(%arg0: i32, %arg1: i32) -> (i32, i32, i32, i32) {
    %c0_i32 = arith.constant 0 : i32
    %c0_i32_0 = arith.constant 0 : i32
    %c0_i32_1 = arith.constant 0 : i32
    return %arg0, %c0_i32, %arg1, %c0_i32_0 : i32, i32, i32, i32
  }
}

</mosaic_0001>

<bundles_post_ra>
// kernel: tpu_custom_call.1
= control target key start
LH: loop header
LB: loop body
LE: loop exit
PB: predicated region body
PF: predicated region fallthrough
CT: control target
= control target key end

     0   :  { %10 = vsyncpa [#allocation4], 0  ;;  %s1383_s0 = inlined_call_operand.hbm [shape: f32[2,8,32], index: 0, kind: input, shape index: {}]   ;;  %s1384_s1 = inlined_call_operand.hbm [shape: f32[32,96], index: 1, kind: input, shape index: {}]   ;;  %s1385_s2 = inlined_call_operand.hbm [shape: f32[2,4,8,8], index: 2, kind: output, shape index: {0}]   ;;  %s1386_s3 = inlined_call_operand.hbm [shape: f32[2,4,8,8], index: 3, kind: output, shape index: {1}]   ;;  %s1387_s4 = inlined_call_operand.hbm [shape: f32[2,4,8,8], index: 4, kind: output, shape index: {2}]  }
   0x1   :  { %12 = vsyncpa [#allocation4 + $0x1], 0 }
   0x2   :  { %13 = vsyncpa [#allocation7], 0 }
   0x3   :  { %14 = vsyncpa [#allocation5], 0 }
   0x4   :  { %16 = vsyncpa [#allocation5 + $0x1], 0 }
   0x5   :  { %17 = vsyncpa [#allocation10], 0 }
   0x6   :  { %19 = vsyncpa [#allocation10 + $0x1], 0  ;;  %s1058_s15 = smov 0   ;;  %s1060_s16 = smov 0  }
   0x7   :  { %s1062_s17 = smov 0   ;;  %s1064_s18 = smov 0  }
   0x8   :  { %s1066_s19 = smov 0   ;;  %s1068_s20 = smov 0  }
   0x9 LB: > { %s1089_s21 = sadd.s32 4294967295, %s1008_s20   ;;  %s1391_s22 = sadd.s32 4294967294, %s1008_s20   ;;  %s1008_s20 = sphi %s1068_s20, %s25_s20   ;;  %s1004_s19 = sphi %s1066_s19, %s1412_s19   ;;  %s1000_s18 = sphi %s1064_s18, %s1411_s18   ;;  %s996_s17 = sphi %s1062_s17, %s1410_s17   ;;  %s992_s16 = sphi %s1060_s16, %s1409_s16   ;;  %s988_s15 = sphi %s1058_s15, %s1408_s15  }
   0xa   : > { %p59_p0 = scmp.ne.s32.totalorder %s992_s16, %s988_s15  ;;  %p1388_p1 = scmp.eq.s32.totalorder %s1089_s21, 0 }
   0xb   : > { %p112_p3 = scmp.eq.s32.totalorder %s1391_s22, 1  ;;  %p646_p5 = scmp.ge.s32.totalorder %s1008_s20, 1 }
   0xc   : > { %p1100_p4 = por %p1388_p1, %p59_p0  ;;  %p175_p7 = scmp.lt.s32.totalorder %s1008_s20, 3 }
   0xd   : > { %p1105_p6 = por %p112_p3, %p59_p0  ;;  %s1010_s26 = smov [#allocation6]  }
   0xe   : > { %s1392_s23 = scalar_select %p1100_p4, 1, 0 }
   0xf   : > { %s1393_s24 = scalar_select %p1105_p6, 1, 0 }
  0x10   : > { %p1110_p8 = pnand %p646_p5, %p175_p7  ;;  %s187_s27 = sshll.u32 %s1010_s26, 4  ;;  %s188_s27 = int_to_ptr.vmem [resolvable:$true] %s187_s27 }
  0x11   : > { %s37_s29 = sadd.s32 1, %s1004_s19  ;;  %s804_s6 = scalar_lea.hbm %s1384_s1, 512 }
  0x12   : > { %s1394_s25 = scalar_select %p1110_p8, 1, 0 }
  0x13   : > { %p715_p9 = pneg %p1110_p8  ;;  %p805_p12 = scmp.ne.s32.totalorder %s1384_s1, %s804_s6 }
  0x14   : > { %p811_p5 = scmp.lt.u32.totalorder %s804_s6, %s1384_s1 }
  0x15   : > { %p1119_p11 = pnand %p715_p9, %p1388_p1 }
  0x17   : > { %p806_p13 = pneg %p1119_p11 }
  0x19   : > { %p807_p0 = pnand %p806_p13, %p805_p12 }
  0x1b   : > { %p808_p3 = pneg %p807_p0 }
  0x1d   : > { %p813_p7 = pnand %p811_p5, %p808_p3 }
  0x1f   : > { %816 = shalt.err (!%p813_p7)
}
  0x20   : > { %s817_s11 = scalar_lea.vmem %s188_s27, 512  ;;  %p825_p2 = scmp.lt.s32.totalorder %s188_s27, %s188_s27 }
  0x21   : > { %p818_p9 = scmp.ne.s32.totalorder %s188_s27, %s817_s11  ;;  %p826_p6 = scmp.lt.s32.totalorder %s817_s11, %s817_s11 }
  0x23   : > { %p820_p10 = pnand %p818_p9, %p806_p13  ;;  %p827_p4 = por %p826_p6, %p825_p2 }
  0x25   : > { %p821_p1 = pneg %p820_p10 }
  0x27   : > { %p828_p8 = pnand %p827_p4, %p821_p1 }
  0x29   : > { %831 = shalt.err (!%p828_p8)
}
  0x2a   : > { %s1011_s12 = smov 128   ;;  %s1012_s13 = smov 8  }
  0x2b   : > { %718 = dma.hbm_to_vmem [thread:$0]  (!%p1119_p11), %s1384_s1, 512, %s188_s27, [#allocation7], %s1011_s12, %s1011_s12, %s1012_s13  }
  0x2c   : > { %p39_p1 = scmp.ge.s32.totalorder %s37_s29, 2  ;;  %s46_s30 = sadd.s32 1, %s996_s17 }
  0x2d   : > { %p53_p2 = scmp.ne.s32.totalorder %s996_s17, %s992_s16  ;;  %p54_p4 = scmp.eq.s32.totalorder %s1008_s20, 0 }
  0x2e   : > { %s1414_s29 = smov (%p39_p1, %s37_s29), 0  ;;  %p1397_p8 = scmp.eq.s32.totalorder %s1089_s21, 1 }
  0x2f   : > { %p1146_p6 = por %p54_p4, %p53_p2  ;;  %s41_s28 = ssub.s32 %s1004_s19, %s1414_s29 }
  0x30   : > { %p1152_p10 = por %p1397_p8, %p53_p2  ;;  %p734_p12 = scmp.lt.s32.totalorder %s1008_s20, 2 }
  0x31   : > { %p44_p11 = scmp.eq.s32.totalorder %s41_s28, 0  ;;  %s201_s27 = sand.u32 1, %s996_s17  }
  0x32   : > { %s649_s7 = sshll.u32 %s201_s27, 3  ;;  %s650_s9 = sshll.u32 %s1004_s19, 7 }
  0x33   : > { %s1161_s8 = scalar_select %p44_p11, %s996_s17, %s46_s30  }
  0x34   : > { %s1167_s12 = scalar_lea.hbm %s1383_s0, %s650_s9  ;;  %s205_s13 = scalar_lea.vmem [#allocation3], %s649_s7 }
  0x35   : > { %s213_s14 = sshll.u32 %s205_s13, 4  ;;  %p1173_p13 = pnand %p734_p12, %p1146_p6  ;;  %s1169_s14 = int_to_ptr.vmem [resolvable:$true] %s213_s14 }
  0x36   : > { %s202_s30 = scalar_lea.sflag [#allocation4], %s201_s27  ;;  %s832_s28 = scalar_lea.hbm %s1167_s12, 128 }
  0x37   : > { %p833_p0 = scmp.ne.s32.totalorder %s1167_s12, %s832_s28  ;;  %p834_p3 = pneg %p1173_p13 }
  0x38   : > { %s837_s10 = scalar_lea.hbm %s1383_s0, 256  ;;  %p838_p9 = scmp.lt.u32.totalorder %s1167_s12, %s1383_s0 }
  0x39   : > { %p835_p5 = pnand %p834_p3, %p833_p0  ;;  %p839_p1 = scmp.lt.u32.totalorder %s837_s10, %s832_s28 }
  0x3a   : > { %p841_p4 = scmp.lt.u32.totalorder %s832_s28, %s1167_s12 }
  0x3b   : > { %p836_p7 = pneg %p835_p5  ;;  %p840_p2 = por %p839_p1, %p838_p9 }
  0x3d   : > { %p842_p6 = por %p841_p4, %p840_p2 }
  0x3f   : > { %p843_p8 = pnand %p842_p6, %p836_p7 }
  0x41   : > { %846 = shalt.err (!%p843_p8)
}
  0x42   : > { %s847_s27 = scalar_lea.vmem %s1169_s14, 128  ;;  %s1013_s13 = smov [#allocation3]  }
  0x43   : > { %p848_p12 = scmp.ne.s32.totalorder %s1169_s14, %s847_s27  ;;  %s852_s7 = sshll.u32 %s1013_s13, 4  ;;  %s853_s7 = int_to_ptr.vmem [resolvable:$false] %s852_s7 }
  0x44   : > { %s854_s9 = scalar_lea.vmem %s853_s7, 256  ;;  %p855_p5 = scmp.lt.s32.totalorder %s1169_s14, %s853_s7 }
  0x45   : > { %p850_p11 = pnand %p848_p12, %p834_p3  ;;  %p856_p9 = scmp.lt.s32.totalorder %s854_s9, %s847_s27 }
  0x47   : > { %p851_p0 = pneg %p850_p11  ;;  %p857_p1 = por %p856_p9, %p855_p5 }
  0x49   : > { %p858_p2 = pnand %p857_p1, %p851_p0 }
  0x4b   : > { %861 = shalt.err (!%p858_p2)
}
  0x4c   : > { %722 = dma.hbm_to_vmem [thread:$0]  (!%p1173_p13), %s1167_s12, 128, %s1169_s14, %s202_s30  }
  0x4d   : > { %p1400_p7 = scmp.ne.s32.totalorder %s1394_s25, 0 }
  0x4e   : > { %s1205_s28 = sand.u32 (!%p1400_p7), 1, %s992_s16   ;;  %p1401_p3 = scmp.ne.s32.totalorder (!%p1400_p7), %s1392_s23, 0 }
  0x4f   : > { %222 = sbr.rel (%p1400_p7) target bundleno = 501 (0x1f5), region = 28  ;;  %s652_s10 = sshll.u32 (!%p1400_p7), %s1205_s28, 3 }
  0x50   : > { %s225_s5 = scalar_lea.sflag (!%p1400_p7), [#allocation4], %s1205_s28  ;;  %s228_s11 = scalar_lea.vmem (!%p1400_p7), [#allocation3], %s652_s10 }
  0x56   : > { %971 = dma.done.wait (%p1401_p3), %s225_s5, 128  }
  0x57   : > { %973 = vsyncadd (%p1401_p3), %s225_s5, 4294967168  ;;  %p1402_p4 = scmp.eq.s32.totalorder %s1089_s21, 0 }
  0x59   : > { %975 = dma.done.wait (%p1402_p4), [#allocation7], 512   ;;  %p1403_p13 = pmov %p1402_p4 }
  0x5a   : > { %v1014_v0 = vmov 0.0|0.0   ;;  %vm1015_vm0 = vmmov 0   ;;  %v1016_v1 = vmov 0.0   ;;  %v268_v2 = vld [vmem:[#allocation6] sm:$0xff]  ;;  %v269_v3 = vld [vmem:[#allocation6 + $0x8] sm:$0xff]  ;;  %v270_v4 = vld [vmem:[#allocation6 + $0x10] sm:$0xff] }
  0x5b   : > { %977 = vsyncadd (%p1403_p13), [#allocation7], 4294966784  ;;  %697 = vmatprep.subr.bf16.mxu0 %v1014_v0  ;;  %694 = vmatprep.mubr.msk.f32.mxu0 %vm1015_vm0, %v1016_v1  ;;  %v698_v5 = vpack.c.bf16 %v269_v3, %v268_v2  ;;  %v271_v6 = vld [vmem:[#allocation6 + $0x18] sm:$0xff]  ;;  %vm272_vm1 = vcmask 261120   ;;  %vm346_vm2 = vcmask 785408   ;;  %s1218_s23 = sshll.u32 %s1205_s28, 5 }
  0x5c   : > { %v701_v7 = vpack.c.bf16 %v271_v6, %v270_v4  ;;  %v267_v8 = vld [vmem:[%s228_s11] sm:$0xff]  ;;  %vm349_vm3 = vcmask 64512   ;;  %s1017_s25 = smov 80   ;;  %s1018_s12 = smov 96  }
  0x5d   : > { %699 = vmatpush3.bf16.msra.mxu0 %v698_v5  ;;  %s1221_s14 = scalar_lea.vmem [#allocation8], %s1218_s23  ;;  %s1019_s26 = smov 72  }
  0x5e   : > { %700 = vmatprep.subr.bf16.mxu0 %v1014_v0  ;;  %s1020_s30 = smov 88   ;;  %s1021_s27 = smov 120  }
  0x5f   : > { %s1022_s13 = smov 64   ;;  %s1023_s7 = smov 112  }
  0x60   : > { %s1024_s9 = smov 56   ;;  %s1025_s10 = smov 104  }
  0x61   : > { %702 = vmatpush3.bf16.msra.mxu0 %v701_v7  ;;  %s1026_s5 = smov 48   ;;  %s1027_s11 = smov 40  }
  0x64   : > { %695 = vmatmul.mubr.msk.f32.vlgmr.msra.gmra.mrb[0].mxu0 %vm272_vm1, %v267_v8 }
 0x137   : > { %v342_v9 = vpop.f32.mrb[0].mxu0 }
 0x138   : > { %347 = vst.msk [vmem:[#allocation2] sm:$0xff] %vm346_vm2, %v342_v9  ;;  %v696_v10 = vpop.f32.mrb[1].mxu0 }
 0x13f   : > { %v391_v11 = vld [vmem:[#allocation2] sm:$0xff] }
 0x140   : > { %393 = vrot.lane.b32.xlu1 %v391_v11, %s1017_s25  ;;  %353 = vrot.lane.b32.xlu0 %v391_v11, %s1018_s12  ;;  %350 = vst.msk [vmem:[%s1221_s14] sm:$0xff] %vm349_vm3, %v391_v11  ;;  %s259_s25 = scalar_lea.vmem [#allocation9], %s1218_s23 }
 0x141   : > { %s468_s12 = sshll.u32 %s259_s25, 4  ;;  %s1230_s12 = int_to_ptr.vmem [resolvable:$true] %s468_s12 }
 0x144   : > { %414 = vrot.lane.b32.xlu1 %v391_v11, %s1019_s26  ;;  %372 = vrot.lane.b32.xlu0 %v391_v11, %s1020_s30  ;;  %s431_s26 = sand.u32 1, %s1089_s21   ;;  %s1228_s30 = sshll.u32 %s1000_s18, 9 }
 0x145   : > { %s1242_s18 = scalar_lea.sflag [#allocation10], %s431_s26  ;;  %s862_s21 = scalar_lea.vmem %s1230_s12, 512 }
 0x146   : > { %p863_p6 = scmp.ne.s32.totalorder %s1230_s12, %s862_s21 }
 0x148   : > { %365 = vrot.lane.b32.xlu1 %v391_v11, %s1021_s27  ;;  %359 = vrot.lane.b32.xlu0 %v391_v11, %s1022_s13  ;;  %p864_p8 = pnand %p863_p6, %p1152_p10 }
 0x14a   : > { %p865_p12 = pneg %p864_p8 }
 0x14c   : > { %386 = vrot.lane.b32.xlu1 %v391_v11, %s1023_s7  ;;  %379 = vrot.lane.b32.xlu0 %v391_v11, %s1024_s9  ;;  %s1238_s7 = scalar_lea.hbm %s1386_s3, %s1228_s30  ;;  %s1028_s9 = smov [#allocation9]  }
 0x150   : > { %407 = vrot.lane.b32.xlu1 %v391_v11, %s1025_s10  ;;  %400 = vrot.lane.b32.xlu0 %v391_v11, %s1026_s5  ;;  %s866_s10 = sshll.u32 %s1028_s9, 4  ;;  %s867_s10 = int_to_ptr.vmem [resolvable:$false] %s866_s10 }
 0x151   : > { %s868_s5 = scalar_lea.vmem %s867_s10, 1024  ;;  %p869_p11 = scmp.lt.s32.totalorder %s1230_s12, %s867_s10 }
 0x152   : > { %p870_p0 = scmp.lt.s32.totalorder %s868_s5, %s862_s21 }
 0x154   : > { %421 = vrot.lane.b32.xlu0 %v391_v11, %s1027_s11  ;;  %p871_p5 = por %p870_p0, %p869_p11 }
 0x156   : > { %p872_p9 = pnand %p871_p5, %p865_p12 }
 0x1b2   : > { %v394_v12 = vpop.permute.xlu1 %393  ;;  %v354_v13 = vpop.permute.xlu0 %353 }
 0x1b3   : > { %662 = vst.msk [vmem:[%s259_s25 + $0x10] sm:$0xff] %vm349_vm3, %v394_v12  ;;  %356 = vst.msk [vmem:[%s259_s25] sm:$0xff] %vm349_vm3, %v354_v13 }
 0x1b6   : > { %v415_v14 = vpop.permute.xlu1 %414  ;;  %v373_v15 = vpop.permute.xlu0 %372 }
 0x1b7   : > { %665 = vst.msk [vmem:[%s259_s25 + $0x18] sm:$0xff] %vm349_vm3, %v415_v14  ;;  %659 = vst.msk [vmem:[%s259_s25 + $0x8] sm:$0xff] %vm349_vm3, %v373_v15 }
 0x1b8   : > { %875 = shalt.err (!%p872_p9)
}
 0x1b9   : > { %s876_s11 = scalar_lea.hbm %s1238_s7, 512  ;;  %s880_s27 = scalar_lea.hbm %s1386_s3, 1024 }
 0x1ba   : > { %p877_p1 = scmp.ne.s32.totalorder %s1238_s7, %s876_s11  ;;  %p881_p3 = scmp.lt.u32.totalorder %s1238_s7, %s1386_s3 }
 0x1bb   : > { %p882_p4 = scmp.lt.u32.totalorder %s880_s27, %s876_s11  ;;  %p884_p6 = scmp.lt.u32.totalorder %s876_s11, %s1238_s7 }
 0x1bc   : > { %p878_p2 = pnand %p877_p1, %p1152_p10 }
 0x1bd   : > { %p883_p13 = por %p882_p4, %p881_p3 }
 0x1be   : > { %p879_p7 = pneg %p878_p2 }
 0x1bf   : > { %p885_p8 = por %p884_p6, %p883_p13 }
 0x1c1   : > { %p886_p12 = pnand %p885_p8, %p879_p7 }
 0x1c3   : > { %889 = shalt.err (!%p886_p12)
}
 0x1c4   : > { %s1029_s21 = smov 128   ;;  %s1030_s10 = smov 8   ;;  %v366_v16 = vpop.permute.xlu1 %365  ;;  %v360_v17 = vpop.permute.xlu0 %359 }
 0x1c5   : > { %710 = dma.vmem_to_hbm [thread:$0]  (%p1152_p10), %s1230_s12, 512, %s1238_s7, %s1242_s18, %s1029_s21, %s1029_s21, %s1030_s10  }
 0x1c6   : > { %658 = vst.msk [vmem:[%s1221_s14 + $0x8] sm:$0xff] %vm349_vm3, %v366_v16  ;;  %s1272_s5 = scalar_lea.vmem [#allocation11], %s1218_s23  ;;  %s451_s11 = sshll.u32 %s1221_s14, 4  ;;  %s1281_s11 = int_to_ptr.vmem [resolvable:$true] %s451_s11 }
 0x1c7   : > { %362 = vst.msk [vmem:[%s1272_s5] sm:$0xff] %vm349_vm3, %v360_v17  ;;  %s1287_s23 = scalar_lea.hbm %s1385_s2, %s1228_s30  ;;  %s427_s26 = scalar_lea.sflag [#allocation5], %s1205_s28 }
 0x1c8   : > { %v387_v18 = vpop.permute.xlu1 %386  ;;  %v380_v19 = vpop.permute.xlu0 %379  ;;  %s890_s27 = scalar_lea.vmem %s1281_s11, 512  ;;  %s1031_s13 = smov [#allocation8]  }
 0x1c9   : > { %661 = vst.msk [vmem:[%s1221_s14 + $0x10] sm:$0xff] %vm349_vm3, %v387_v18  ;;  %660 = vst.msk [vmem:[%s1272_s5 + $0x8] sm:$0xff] %vm349_vm3, %v380_v19  ;;  %p891_p11 = scmp.ne.s32.totalorder %s1281_s11, %s890_s27  ;;  %s894_s9 = sshll.u32 %s1031_s13, 4  ;;  %s895_s9 = int_to_ptr.vmem [resolvable:$false] %s894_s9 }
 0x1ca   : > { %s896_s12 = scalar_lea.vmem %s895_s9, 1024  ;;  %p897_p9 = scmp.lt.s32.totalorder %s1281_s11, %s895_s9 }
 0x1cb   : > { %p892_p0 = pnand %p891_p11, %p1152_p10  ;;  %p898_p1 = scmp.lt.s32.totalorder %s896_s12, %s890_s27 }
 0x1cc   : > { %v408_v20 = vpop.permute.xlu1 %407  ;;  %v401_v21 = vpop.permute.xlu0 %400 }
 0x1cd   : > { %664 = vst.msk [vmem:[%s1221_s14 + $0x18] sm:$0xff] %vm349_vm3, %v408_v20  ;;  %663 = vst.msk [vmem:[%s1272_s5 + $0x10] sm:$0xff] %vm349_vm3, %v401_v21  ;;  %p893_p5 = pneg %p892_p0  ;;  %p899_p2 = por %p898_p1, %p897_p9 }
 0x1cf   : > { %p900_p7 = pnand %p899_p2, %p893_p5 }
 0x1d1   : > { %903 = shalt.err (!%p900_p7)
}
 0x1d2   : > { %s904_s14 = scalar_lea.hbm %s1287_s23, 512  ;;  %s908_s13 = scalar_lea.hbm %s1385_s2, 1024 }
 0x1d3   : > { %p905_p3 = scmp.ne.s32.totalorder %s1287_s23, %s904_s14  ;;  %p909_p6 = scmp.lt.u32.totalorder %s1287_s23, %s1385_s2 }
 0x1d4   : > { %p910_p8 = scmp.lt.u32.totalorder %s908_s13, %s904_s14  ;;  %p912_p11 = scmp.lt.u32.totalorder %s904_s14, %s1287_s23 }
 0x1d5   : > { %p906_p4 = pnand %p905_p3, %p1152_p10 }
 0x1d6   : > { %p911_p12 = por %p910_p8, %p909_p6 }
 0x1d7   : > { %p907_p13 = pneg %p906_p4 }
 0x1d8   : > { %p913_p0 = por %p912_p11, %p911_p12 }
 0x1da   : > { %p914_p5 = pnand %p913_p0, %p907_p13 }
 0x1dc   : > { %917 = shalt.err (!%p914_p5)
}
 0x1dd   : > { %709 = dma.vmem_to_hbm [thread:$0]  (%p1152_p10), %s1281_s11, 512, %s1287_s23, %s427_s26, %s1029_s21, %s1029_s21, %s1030_s10   ;;  %v422_v22 = vpop.permute.xlu0 %421 }
 0x1de   : > { %s1404_s22 = sshll.u32 %s1272_s5, 4  ;;  %s1329_s12 = scalar_lea.hbm %s1387_s4, %s1228_s30  ;;  %666 = vst.msk [vmem:[%s1272_s5 + $0x18] sm:$0xff] %vm349_vm3, %v422_v22  ;;  %s1323_s22 = int_to_ptr.vmem [resolvable:$true] %s1404_s22 }
 0x1df   : > { %s918_s28 = scalar_lea.vmem %s1323_s22, 512  ;;  %s1032_s11 = smov [#allocation11]  }
 0x1e0   : > { %p919_p9 = scmp.ne.s32.totalorder %s1323_s22, %s918_s28  ;;  %s922_s23 = sshll.u32 %s1032_s11, 4  ;;  %s923_s23 = int_to_ptr.vmem [resolvable:$false] %s922_s23 }
 0x1e1   : > { %s924_s26 = scalar_lea.vmem %s923_s23, 1024  ;;  %p925_p7 = scmp.lt.s32.totalorder %s1323_s22, %s923_s23 }
 0x1e2   : > { %p920_p1 = pnand %p919_p9, %p1152_p10  ;;  %p926_p3 = scmp.lt.s32.totalorder %s924_s26, %s918_s28 }
 0x1e4   : > { %p921_p2 = pneg %p920_p1  ;;  %p927_p4 = por %p926_p3, %p925_p7 }
 0x1e6   : > { %p928_p13 = pnand %p927_p4, %p921_p2 }
 0x1e8   : > { %931 = shalt.err (!%p928_p13)
}
 0x1e9   : > { %s932_s30 = scalar_lea.hbm %s1329_s12, 512  ;;  %s936_s7 = scalar_lea.hbm %s1387_s4, 1024 }
 0x1ea   : > { %p933_p6 = scmp.ne.s32.totalorder %s1329_s12, %s932_s30  ;;  %p937_p11 = scmp.lt.u32.totalorder %s1329_s12, %s1387_s4 }
 0x1eb   : > { %p938_p0 = scmp.lt.u32.totalorder %s936_s7, %s932_s30  ;;  %p940_p9 = scmp.lt.u32.totalorder %s932_s30, %s1329_s12 }
 0x1ec   : > { %p934_p8 = pnand %p933_p6, %p1152_p10 }
 0x1ed   : > { %p939_p5 = por %p938_p0, %p937_p11 }
 0x1ee   : > { %p935_p12 = pneg %p934_p8 }
 0x1ef   : > { %p941_p1 = por %p940_p9, %p939_p5 }
 0x1f1   : > { %p942_p2 = pnand %p941_p1, %p935_p12 }
 0x1f3   : > { %945 = shalt.err (!%p942_p2)
}
 0x1f4   : > { %711 = dma.vmem_to_hbm [thread:$0]  (%p1152_p10), %s1323_s22, 512, %s1329_s12, %s1242_s18, %s1029_s21, %s1029_s21, %s1030_s10  }
 0x1f5 PF: > { %s500_s25 = sand.u32 1, %s988_s15   ;;  %p1405_p7 = scmp.ne.s32.totalorder %s1393_s24, 0 }
 0x1f6   : > { %p1406_p3 = scmp.ge.s32.totalorder %s1008_s20, 2  ;;  %s501_s27 = scalar_lea.sflag [#allocation5], %s500_s25 }
 0x1f8   : > { %p724_p4 = pnand %p1406_p3, %p1405_p7 }
 0x1fa   : > { %979 = dma.done.wait (!%p724_p4), %s501_s27, 512  }
 0x1fb   : > { %981 = vsyncadd (!%p724_p4), %s501_s27, 4294966784  ;;  %s1407_s6 = sadd.s32 4294967294, %s1008_s20  }
 0x1fc   : > { %s509_s28 = sand.u32 1, %s1407_s6  }
 0x1fd   : > { %s510_s11 = scalar_lea.sflag [#allocation10], %s509_s28 }
 0x1fe   : > { %983 = dma.done.wait (!%p724_p4), %s510_s11, 1024  }
 0x1ff   : > { %985 = vsyncadd (!%p724_p4), %s510_s11, 4294966272  ;;  %s25_s20 = sadd.s32 1, %s1008_s20   ;;  %s1408_s15 = smov %s992_s16 }
 0x200   : > { %p22_p10 = scmp.ge.s32.totalorder %s25_s20, 4   ;;  %s1409_s16 = smov %s996_s17 }
 0x201   : > { %s1410_s17 = smov %s1161_s8  ;;  %s1411_s18 = smov %s1004_s19 }
 0x202   : > { %s1412_s19 = smov %s1414_s29  ;;  %24 = sbr.rel (!%p22_p10) target bundleno = 9 (0x9), region = 118 }
 0x209   :  { %524 = vsyncpa [#allocation4], 1 }
 0x20a   :  { %526 = vsyncpa [#allocation4 + $0x1], 1 }
 0x20b   :  { %527 = vsyncpa [#allocation7], 1 }
 0x20c   :  { %528 = vsyncpa [#allocation5], 1 }
 0x20d   :  { %530 = vsyncpa [#allocation5 + $0x1], 1 }
 0x20e   :  { %531 = vsyncpa [#allocation10], 1 }
 0x20f   :  { %533 = vsyncpa [#allocation10 + $0x1], 1 }

</bundles_post_ra>
